<compile_context>
chip_gen: v6e
topology: v6e:2x2x1
jax: 0.10.0
libtpu: 0.0.40
codegen_flags: <defaults>
</compile_context>

<pallas_src>
import functools

import jax
import jax.numpy as jnp
from jax.experimental import pallas as pl
from jax.experimental.pallas import tpu as pltpu


def _round_up(x, m):
    return ((x + m - 1) // m) * m


# ----------------------------------------------------------------------------
# Fused Pallas kernel: sigmoid-CE + dice over sampled points (tiled over R,
# accumulated in the resident packed output block) + weighted classification CE
# (computed once per layer at (s==0, r==0)).
# ----------------------------------------------------------------------------
def _fused_loss_kernel(pt_logits_ref, pt_labels_ref, cls_logits_ref, cls_tgt_ref,
                       scalars_ref, out_ref, *, bg_coef, tile_r, n_r):
    s = pl.program_id(1)
    r = pl.program_id(2)

    inv_num_points = scalars_ref[0]          # runtime scalars from SMEM
    inv_num_masks = scalars_ref[1]
    valid_rows = scalars_ref[2]

    lane = jax.lax.broadcasted_iota(jnp.int32, (1, 128), 1)

    @pl.when(r == 0)
    def _init():
        out_ref[0, 0] = jnp.zeros((1, 128), jnp.float32)

    @pl.when((r == 0) & (s == 0))
    def _cls():
        # Weighted cross-entropy with ignore_index=-100.  Classes on the sublane
        # axis (C1 small), queries B*Q lane-dense.  Class weights built from iota.
        logits = cls_logits_ref[0].astype(jnp.float32)           # [C1, N]
        tgt = cls_tgt_ref[0]                                     # [1,  N] int32
        cls_iota = jax.lax.broadcasted_iota(jnp.int32, logits.shape, 0)
        w_full = jnp.where(cls_iota == 0, bg_coef, 1.0).astype(jnp.float32)

        m = jnp.max(logits, axis=0, keepdims=True)               # [1, N]
        lse = jnp.log(jnp.sum(jnp.exp(logits - m), axis=0, keepdims=True)) + m
        logp = logits - lse                                      # [C1, N]

        onehot = cls_iota == tgt                                 # [C1, N] bool
        picked_logp = jnp.sum(jnp.where(onehot, logp, 0.0), axis=0, keepdims=True)
        picked_w = jnp.sum(jnp.where(onehot, w_full, 0.0), axis=0, keepdims=True)
        valid = tgt != -100                                      # [1, N]

        loss_sum = jnp.sum(jnp.where(valid, -picked_logp * picked_w, 0.0),
                           axis=1, keepdims=True)
        w_sum = jnp.sum(jnp.where(valid, picked_w, 0.0), axis=1, keepdims=True)
        # guard against all-ignored rows (PyTorch would emit NaN here)
        cls_val = loss_sum / jnp.maximum(w_sum, 1e-12)           # (1, 1)
        out_ref[0, 0] = out_ref[0, 0] + jnp.where(lane == 2, cls_val, 0.0)

    # ---- sigmoid BCE + dice over this R-tile (accumulated across r) --------
    xb = pt_logits_ref[0]                                        # [tile_r, P] native dtype
    yb = pt_labels_ref[0]

    pb = jax.nn.sigmoid(xb)                                      # EUP in native dtype
    logt = jnp.log(jnp.maximum(pb, 1.0 - pb))                    # == -log1p(exp(-|x|)) reuse
    x = xb.astype(jnp.float32)
    y = yb.astype(jnp.float32)
    p = pb.astype(jnp.float32)

    ce = jnp.maximum(x, 0.0) - x * y - logt.astype(jnp.float32)
    ce_rows = jnp.sum(ce, axis=1, keepdims=True) * inv_num_points        # [tile_r, 1]

    num = 2.0 * jnp.sum(p * y, axis=1, keepdims=True)
    den = jnp.sum(p, axis=1, keepdims=True) + jnp.sum(y, axis=1, keepdims=True)
    dice_rows = 1.0 - (num + 1.0) / (den + 1.0)                           # [tile_r, 1]

    # Mask the ragged / padded row tail (no HBM pad copies in the wrapper).
    row_start = (s * n_r + r) * tile_r
    row_idx = jax.lax.broadcasted_iota(jnp.int32, (tile_r, 1), 0) + row_start
    row_ok = row_idx.astype(jnp.float32) < valid_rows                     # [tile_r, 1]

    ce_tile = jnp.sum(jnp.where(row_ok, ce_rows, 0.0), axis=0, keepdims=True)     # (1,1)
    dice_tile = jnp.sum(jnp.where(row_ok, dice_rows, 0.0), axis=0, keepdims=True) # (1,1)

    out_ref[0, 0] = out_ref[0, 0] + (jnp.where(lane == 0, ce_tile, 0.0)
                                     + jnp.where(lane == 1, dice_tile, 0.0)) * inv_num_masks


def fused_losses(point_logits, point_labels, cls_logits_t, target_classes_t, *,
                 bg_coef, num_points, num_masks, valid_rows):
    """point_logits/labels: [L, R, P]; cls_logits_t: [L, C1, N]; targets: [L, 1, N].
    Returns (loss_mask_ce, loss_mask_dice, loss_cls), each of shape [L]."""
    L, R, P = point_logits.shape
    _, C1, N = cls_logits_t.shape
    itemsize = jnp.dtype(point_logits.dtype).itemsize
    P_lane = _round_up(max(P, 1), 128)          # lane-padded footprint estimate only

    # Generation-aware tiling: bigger blocks / scoped VMEM on 128-MiB parts,
    # conservative on v7x (64 MiB physical VMEM).
    try:
        vmem_cap = pltpu.get_tpu_info().vmem_capacity_bytes
    except Exception:
        vmem_cap = 64 * 1024 * 1024
    if vmem_cap >= 100 * 1024 * 1024:           # v5e / v6e
        block_cap, vmem_limit = 8 * 1024 * 1024, 64 * 1024 * 1024
    else:                                        # v7x
        block_cap, vmem_limit = 4 * 1024 * 1024, 32 * 1024 * 1024

    max_tile_rows = max(8, (block_cap // (P_lane * itemsize)) // 8 * 8)
    if R <= 8:
        tile_r = R                               # full-extent block (no 8-alignment needed)
    else:
        tile_r = int(max(8, min(max_tile_rows, (R // 8) * 8)))
    n_total = -(-R // tile_r)

    # Split the R reduction across two parallel groups when L can't feed both
    # v7x TensorCores; harmless (S=1) on single-TC parts.
    if L == 1 and n_total >= 2 and n_total % 2 == 0:
        S, n_r = 2, n_total // 2
    else:
        S, n_r = 1, n_total

    scalars = jnp.stack([
        jnp.asarray(1.0 / float(num_points), jnp.float32),
        1.0 / jnp.asarray(num_masks, jnp.float32),
        jnp.asarray(valid_rows, jnp.float32),
    ])

    kernel = functools.partial(_fused_loss_kernel, bg_coef=float(bg_coef),
                               tile_r=tile_r, n_r=n_r)

    cost = pl.CostEstimate(
        flops=int(10 * L * R * P + 8 * L * C1 * N),
        transcendentals=int(2 * L * R * P + L * C1 * N),
        bytes_accessed=int(2 * L * R * P * itemsize + L * (C1 + 1) * N * 4
                           + L * S * 128 * 4))

    out = pl.pallas_call(
        kernel,
        out_shape=jax.ShapeDtypeStruct((L, S, 1, 128), jnp.float32),
        grid=(L, S, n_r),
        in_specs=[
            pl.BlockSpec((1, tile_r, P), lambda l, s, r: (l, s * n_r + r, 0)),
            pl.BlockSpec((1, tile_r, P), lambda l, s, r: (l, s * n_r + r, 0)),
            pl.BlockSpec((1, C1, N), lambda l, s, r: (l, 0, 0)),
            pl.BlockSpec((1, 1, N), lambda l, s, r: (l, 0, 0)),
            pl.BlockSpec(memory_space=pltpu.MemorySpace.SMEM),
        ],
        out_specs=pl.BlockSpec((1, 1, 1, 128), lambda l, s, r: (l, s, 0, 0)),
        compiler_params=pltpu.CompilerParams(
            dimension_semantics=("parallel", "parallel", "arbitrary"),
            vmem_limit_bytes=vmem_limit),
        cost_estimate=cost,
    )(point_logits, point_labels, cls_logits_t, target_classes_t, scalars)

    packed = jnp.sum(out, axis=1)[:, 0]          # [L, 128]; sum over the S split
    return packed[:, 0], packed[:, 1], packed[:, 2]


# ----------------------------------------------------------------------------
# JAX glue: point sampling (F.grid_sample bilinear, align_corners=False)
# ----------------------------------------------------------------------------
def _bilinear_point_sample(img, coords):
    """img: [R, H, W]; coords: [R, P, 2] with (x, y) in [0, 1]. Matches
    F.grid_sample(mode='bilinear', padding_mode='zeros', align_corners=False)."""
    R, H, W = img.shape
    x = coords[..., 0] * W - 0.5
    y = coords[..., 1] * H - 0.5
    x0 = jnp.floor(x)
    y0 = jnp.floor(y)
    x1 = x0 + 1.0
    y1 = y0 + 1.0
    wx1 = x - x0
    wx0 = 1.0 - wx1
    wy1 = y - y0
    wy0 = 1.0 - wy1
    flat = img.reshape(R, H * W)

    def gather(xi, yi):
        xi_i = xi.astype(jnp.int32)
        yi_i = yi.astype(jnp.int32)
        inb = (xi_i >= 0) & (xi_i < W) & (yi_i >= 0) & (yi_i < H)
        xc = jnp.clip(xi_i, 0, W - 1)
        yc = jnp.clip(yi_i, 0, H - 1)
        idx = yc * W + xc
        vals = jnp.take_along_axis(flat, idx, axis=1)
        return jnp.where(inb, vals, 0.0)

    v00 = gather(x0, y0)
    v01 = gather(x1, y0)
    v10 = gather(x0, y1)
    v11 = gather(x1, y1)
    return v00 * wx0 * wy0 + v01 * wx1 * wy0 + v10 * wx0 * wy1 + v11 * wx1 * wy1


def _get_uncertain_point_coords_with_randomness(key, coarse_logits, num_points,
                                                oversample_ratio,
                                                importance_sample_ratio):
    """coarse_logits: [R, H, W] (single-channel mask logits)."""
    R = coarse_logits.shape[0]
    num_sampled = int(num_points * oversample_ratio)
    k1, k2 = jax.random.split(key)
    point_coords = jax.random.uniform(k1, (R, num_sampled, 2), dtype=jnp.float32)
    point_logits = _bilinear_point_sample(coarse_logits, point_coords)
    point_uncertainties = -jnp.abs(point_logits)            # calculate_uncertainty
    num_uncertain = int(importance_sample_ratio * num_points)
    num_random = num_points - num_uncertain
    _, idx = jax.lax.top_k(point_uncertainties, num_uncertain)      # [R, num_uncertain]
    sel = jnp.take_along_axis(point_coords, idx[..., None], axis=1)
    if num_random > 0:
        rand = jax.random.uniform(k2, (R, num_random, 2), dtype=jnp.float32)
        sel = jnp.concatenate([sel, rand], axis=1)
    return jax.lax.stop_gradient(sel)


# ----------------------------------------------------------------------------
# InstanceSegLoss
# ----------------------------------------------------------------------------
class InstanceSegLoss:
    def __init__(self, bg_coef, num_points, oversample_ratio, importance_sample_ratio,
                 max_instances=None, point_dtype=jnp.bfloat16):
        self.weight_dict = {'loss_mask_ce': 5.0, 'loss_mask_dice': 5.0, 'loss_cls': 2.0}
        self.bg_coef = float(bg_coef)
        self.num_points = int(num_points)
        self.oversample_ratio = oversample_ratio
        self.importance_sample_ratio = importance_sample_ratio
        # Fixed total matched-instance budget → static shapes / one compile across
        # batches; invalid rows are masked in-kernel via the runtime valid_rows scalar.
        self.max_instances = max_instances
        # bf16 halves the HBM bytes of the dominant point tensors feeding the kernel.
        self.point_dtype = point_dtype

    def __call__(self, pred_mask_logits, gt_masks, pred_class_logits, gt_classes,
                 cls_ignore_mask=None, rng_key=None):
        L, B, Q, T, H, W = pred_mask_logits.shape
        if rng_key is None:
            rng_key = jax.random.PRNGKey(0)

        Ns = [int(c.shape[0]) for c in gt_classes]
        M = sum(Ns)
        # num_masks (world size 1); clamp then * T like the reference.
        # TODO(synk): distributed all_reduce of num_masks is not modeled here.
        num_masks = max(float(M), 1.0) * T

        # TODO(synk): HungarianMatcher (scipy linear_sum_assignment) has no clean
        # Pallas/JAX equivalent; deterministic identity matching (query i <-> gt i).

        # ---- gather matched masks ONCE for all layers (hoisted out of L-loop)
        src_masks = jnp.concatenate(
            [pred_mask_logits[:, b, :Ns[b]] for b in range(B)], axis=1)   # [L, M, T, H, W]
        tgt_masks = jnp.concatenate(
            [gt_masks[b][:Ns[b]].astype(pred_mask_logits.dtype) for b in range(B)],
            axis=0)                                                       # [M, T, H, W]

        if self.max_instances is not None:
            assert self.max_instances >= M, "max_instances must cover all GT instances"
            M_pad = int(self.max_instances)
            src_masks = jnp.pad(src_masks,
                                ((0, 0), (0, M_pad - M), (0, 0), (0, 0), (0, 0)))
            tgt_masks = jnp.pad(tgt_masks, ((0, M_pad - M), (0, 0), (0, 0), (0, 0)))
        else:
            M_pad = M

        src_masks = src_masks.reshape(L, M_pad * T, H, W)                 # [L, R, H, W]
        tgt_masks = tgt_masks.reshape(M_pad * T, H, W)                    # [R, H, W]
        valid_rows = M * T

        # ---- point sampling, vmapped over L (stays in XLA; see TODO) ------
        keys = jax.random.split(rng_key, L)

        def sample_one(key, src_l):
            coords = _get_uncertain_point_coords_with_randomness(
                key, src_l, self.num_points, self.oversample_ratio,
                self.importance_sample_ratio)
            logits = _bilinear_point_sample(src_l, coords).astype(self.point_dtype)
            labels = jax.lax.stop_gradient(
                _bilinear_point_sample(tgt_masks, coords)).astype(self.point_dtype)
            return logits, labels

        point_logits, point_labels = jax.vmap(sample_one)(keys, src_masks)  # [L, R, P]

        # ---- classification targets (vectorized over L) -------------------
        matched_mask = jnp.zeros((B, Q), bool)
        matched_vals = jnp.zeros((B, Q), jnp.int32)
        for b in range(B):
            matched_mask = matched_mask.at[b, :Ns[b]].set(True)
            matched_vals = matched_vals.at[b, :Ns[b]].set(
                gt_classes[b][:Ns[b]].astype(jnp.int32))
        base = jnp.zeros((L, B, Q), jnp.int32)
        if cls_ignore_mask is not None:
            base = jnp.where(cls_ignore_mask, -100, base)
        # matched queries keep their GT label even when ignore-masked (matches ref)
        target_classes = jnp.where(matched_mask[None], matched_vals[None], base)  # [L,B,Q]

        C1 = pred_class_logits.shape[-1]
        cls_logits_t = jnp.transpose(
            pred_class_logits.reshape(L, B * Q, C1), (0, 2, 1))            # [L, C1, N]
        target_classes_t = target_classes.reshape(L, 1, B * Q).astype(jnp.int32)

        loss_mask_ce, loss_mask_dice, loss_cls = fused_losses(
            point_logits, point_labels, cls_logits_t, target_classes_t,
            bg_coef=self.bg_coef, num_points=self.num_points,
            num_masks=num_masks, valid_rows=valid_rows)

        loss_total = (loss_mask_ce * self.weight_dict['loss_mask_ce']
                      + loss_mask_dice * self.weight_dict['loss_mask_dice']
                      + loss_cls * self.weight_dict['loss_cls'])

        return {'loss_total': loss_total,
                'loss_mask_ce': loss_mask_ce,
                'loss_mask_dice': loss_mask_dice,
                'loss_cls': loss_cls}


# ----------------------------------------------------------------------------
if __name__ == "__main__":
    key = jax.random.PRNGKey(0)
    L, B, Q, T, H, W = 2, 2, 8, 2, 16, 16
    num_classes = 3                      # pred_class_logits last dim = 1 + num_classes
    Ns = [3, 2]                          # GT instances per batch sample

    ks = jax.random.split(key, 8)
    pred_mask_logits = jax.random.normal(ks[0], (L, B, Q, T, H, W), jnp.float32)
    pred_class_logits = jax.random.normal(ks[1], (L, B, Q, num_classes + 1), jnp.float32)
    gt_masks = [
        (jax.random.uniform(ks[2 + i], (Ns[i], T, H, W)) > 0.5).astype(jnp.float32)
        for i in range(B)
    ]
    gt_classes = [
        jax.random.randint(ks[4 + i], (Ns[i],), 1, num_classes + 1) for i in range(B)
    ]
    cls_ignore_mask = jax.random.uniform(ks[6], (L, B, Q)) < 0.2

    # num_points multiple of 128 keeps the point axis lane-dense; max_instances=8
    # gives a fixed R=16 row budget (10 valid rows masked in-kernel).
    loss_fn = InstanceSegLoss(bg_coef=0.1, num_points=128,
                              oversample_ratio=3, importance_sample_ratio=0.75,
                              max_instances=8)
    out = loss_fn(pred_mask_logits, gt_masks, pred_class_logits, gt_classes,
                  cls_ignore_mask=cls_ignore_mask, rng_key=ks[7])
    jax.block_until_ready(out)
    print("KERNEL_OK")
</pallas_src>

<mosaic_0001>
module attributes {stable_mosaic.version = 11 : i64} {
  func.func @_fused_loss_kernel(%arg0: i32, %arg1: i32, %arg2: i32, %arg3: memref<1x16x128xbf16, #tpu.memory_space<vmem>>, %arg4: memref<1x16x128xbf16, #tpu.memory_space<vmem>>, %arg5: memref<1x4x16xf32, #tpu.memory_space<vmem>>, %arg6: memref<1x1x16xi32, #tpu.memory_space<vmem>>, %arg7: memref<3xf32, #tpu.memory_space<smem>>, %arg8: memref<1x1x1x128xf32, #tpu.memory_space<vmem>>) attributes {dimension_semantics = [#tpu.dimension_semantics<parallel>, #tpu.dimension_semantics<parallel>, #tpu.dimension_semantics<arbitrary>], iteration_bounds = array<i64: 2, 1, 1>, scalar_prefetch = 0 : i64, scratch_operands = 0 : i64, tpu.core_type = #tpu.core_type<tc>, window_params = [{transform_indices = @transform_0, window_bounds = array<i64: 1, 16, 128>}, {transform_indices = @transform_1, window_bounds = array<i64: 1, 16, 128>}, {transform_indices = @transform_2, window_bounds = array<i64: 1, 4, 16>}, {transform_indices = @transform_3, window_bounds = array<i64: 1, 1, 16>}, {transform_indices = @transform_4, window_bounds = array<i64: 3>}, {transform_indices = @transform_5, window_bounds = array<i64: 1, 1, 1, 128>}]} {
    %c0 = arith.constant 0 : index
    %0 = memref.load %arg7[%c0] : memref<3xf32, #tpu.memory_space<smem>>
    %c1 = arith.constant 1 : index
    %1 = memref.load %arg7[%c1] : memref<3xf32, #tpu.memory_space<smem>>
    %c2 = arith.constant 2 : index
    %2 = memref.load %arg7[%c2] : memref<3xf32, #tpu.memory_space<smem>>
    %3 = tpu.iota {dimensions = array<i32: 1>} : vector<1x128xi32>
    %c0_i32 = arith.constant 0 : i32
    %4 = arith.cmpi eq, %arg2, %c0_i32 : i32
    %5 = arith.extui %4 : i1 to i32
    %c0_i32_0 = arith.constant 0 : i32
    %6 = arith.cmpi ne, %5, %c0_i32_0 : i32
    scf.if %6 {
      %cst_36 = arith.constant 0.000000e+00 : f32
      %93 = vector.broadcast %cst_36 : f32 to vector<1x128xf32>
      %c0_37 = arith.constant 0 : index
      %c0_38 = arith.constant 0 : index
      %c0_39 = arith.constant 0 : index
      %c0_40 = arith.constant 0 : index
      %94 = vector.load %arg8[%c0_37, %c0_38, %c0_39, %c0_40] : memref<1x1x1x128xf32, #tpu.memory_space<vmem>>, vector<1x1x1x128xf32>
      %95 = vector.shape_cast %94 : vector<1x1x1x128xf32> to vector<1x128xf32>
      %96 = vector.shape_cast %93 : vector<1x128xf32> to vector<1x1x1x128xf32>
      tpu.vector_store %arg8[%c0_37, %c0_38, %c0_39, %c0_40], %96 {strides = array<i32>} : memref<1x1x1x128xf32, #tpu.memory_space<vmem>>, vector<1x1x1x128xf32>,
    } else {
    }
    %c0_i32_1 = arith.constant 0 : i32
    %7 = arith.cmpi eq, %arg2, %c0_i32_1 : i32
    %c0_i32_2 = arith.constant 0 : i32
    %8 = arith.cmpi eq, %arg1, %c0_i32_2 : i32
    %9 = arith.andi %7, %8 : i1
    %10 = arith.extui %9 : i1 to i32
    %c0_i32_3 = arith.constant 0 : i32
    %11 = arith.cmpi ne, %10, %c0_i32_3 : i32
    scf.if %11 {
      %c0_36 = arith.constant 0 : index
      %c0_37 = arith.constant 0 : index
      %c0_38 = arith.constant 0 : index
      %93 = vector.load %arg5[%c0_36, %c0_37, %c0_38] : memref<1x4x16xf32, #tpu.memory_space<vmem>>, vector<1x4x16xf32>
      %94 = vector.shape_cast %93 : vector<1x4x16xf32> to vector<4x16xf32>
      %c0_39 = arith.constant 0 : index
      %c0_40 = arith.constant 0 : index
      %c0_41 = arith.constant 0 : index
      %95 = vector.load %arg6[%c0_39, %c0_40, %c0_41] : memref<1x1x16xi32, #tpu.memory_space<vmem>>, vector<1x1x16xi32>
      %96 = vector.shape_cast %95 : vector<1x1x16xi32> to vector<1x16xi32>
      %97 = tpu.iota {dimensions = array<i32: 0>} : vector<4x16xi32>
      %c0_i32_42 = arith.constant 0 : i32
      %98 = vector.broadcast %c0_i32_42 : i32 to vector<4x16xi32>
      %99 = arith.cmpi eq, %97, %98 : vector<4x16xi32>
      %cst_43 = arith.constant 1.000000e-01 : f32
      %cst_44 = arith.constant 1.000000e+00 : f32
      %100 = vector.broadcast %cst_43 : f32 to vector<4x16xf32>
      %101 = vector.broadcast %cst_44 : f32 to vector<4x16xf32>
      %102 = arith.select %99, %100, %101 : vector<4x16xi1>, vector<4x16xf32>
      %cst_45 = arith.constant dense<0xFF800000> : vector<16xf32>
      %103 = vector.multi_reduction <maximumf>, %94, %cst_45 [0] : vector<4x16xf32> to vector<16xf32>
      %104 = vector.shape_cast %103 : vector<16xf32> to vector<1x16xf32>
      %105 = vector.broadcast %104 : vector<1x16xf32> to vector<4x16xf32>
      %106 = arith.subf %94, %105 : vector<4x16xf32>
      %107 = math.exp %106 : vector<4x16xf32>
      %cst_46 = arith.constant dense<0.000000e+00> : vector<16xf32>
      %108 = vector.multi_reduction <add>, %107, %cst_46 [0] : vector<4x16xf32> to vector<16xf32>
      %109 = vector.shape_cast %108 : vector<16xf32> to vector<1x16xf32>
      %110 = math.log %109 : vector<1x16xf32>
      %111 = arith.addf %110, %104 : vector<1x16xf32>
      %112 = vector.broadcast %111 : vector<1x16xf32> to vector<4x16xf32>
      %113 = arith.subf %94, %112 : vector<4x16xf32>
      %114 = vector.broadcast %96 : vector<1x16xi32> to vector<4x16xi32>
      %115 = arith.cmpi eq, %97, %114 : vector<4x16xi32>
      %cst_47 = arith.constant 0.000000e+00 : f32
      %116 = vector.broadcast %cst_47 : f32 to vector<4x16xf32>
      %117 = arith.select %115, %113, %116 : vector<4x16xi1>, vector<4x16xf32>
      %cst_48 = arith.constant dense<0.000000e+00> : vector<16xf32>
      %118 = vector.multi_reduction <add>, %117, %cst_48 [0] : vector<4x16xf32> to vector<16xf32>
      %119 = vector.shape_cast %118 : vector<16xf32> to vector<1x16xf32>
      %cst_49 = arith.constant 0.000000e+00 : f32
      %120 = vector.broadcast %cst_49 : f32 to vector<4x16xf32>
      %121 = arith.select %115, %102, %120 : vector<4x16xi1>, vector<4x16xf32>
      %cst_50 = arith.constant dense<0.000000e+00> : vector<16xf32>
      %122 = vector.multi_reduction <add>, %121, %cst_50 [0] : vector<4x16xf32> to vector<16xf32>
      %123 = vector.shape_cast %122 : vector<16xf32> to vector<1x16xf32>
      %c-100_i32 = arith.constant -100 : i32
      %124 = vector.broadcast %c-100_i32 : i32 to vector<1x16xi32>
      %125 = arith.cmpi ne, %96, %124 : vector<1x16xi32>
      %cst_51 = arith.constant 0.000000e+00 : f32
      %126 = vector.broadcast %cst_51 : f32 to vector<1x16xf32>
      %127 = arith.subf %126, %119 : vector<1x16xf32>
      %128 = arith.mulf %127, %123 : vector<1x16xf32>
      %cst_52 = arith.constant 0.000000e+00 : f32
      %129 = vector.broadcast %cst_52 : f32 to vector<1x16xf32>
      %130 = arith.select %125, %128, %129 : vector<1x16xi1>, vector<1x16xf32>
      %cst_53 = arith.constant dense<0.000000e+00> : vector<1xf32>
      %131 = vector.multi_reduction <add>, %130, %cst_53 [1] : vector<1x16xf32> to vector<1xf32>
      %132 = vector.shape_cast %131 : vector<1xf32> to vector<1x1xf32>
      %cst_54 = arith.constant 0.000000e+00 : f32
      %133 = vector.broadcast %cst_54 : f32 to vector<1x16xf32>
      %134 = arith.select %125, %123, %133 : vector<1x16xi1>, vector<1x16xf32>
      %cst_55 = arith.constant dense<0.000000e+00> : vector<1xf32>
      %135 = vector.multi_reduction <add>, %134, %cst_55 [1] : vector<1x16xf32> to vector<1xf32>
      %136 = vector.shape_cast %135 : vector<1xf32> to vector<1x1xf32>
      %cst_56 = arith.constant 9.99999996E-13 : f32
      %137 = vector.broadcast %cst_56 : f32 to vector<1x1xf32>
      %138 = arith.maximumf %136, %137 : vector<1x1xf32>
      %139 = arith.divf %132, %138 : vector<1x1xf32>
      %c0_57 = arith.constant 0 : index
      %c0_58 = arith.constant 0 : index
      %c0_59 = arith.constant 0 : index
      %c0_60 = arith.constant 0 : index
      %140 = vector.load %arg8[%c0_57, %c0_58, %c0_59, %c0_60] : memref<1x1x1x128xf32, #tpu.memory_space<vmem>>, vector<1x1x1x128xf32>
      %141 = vector.shape_cast %140 : vector<1x1x1x128xf32> to vector<1x128xf32>
      %c2_i32 = arith.constant 2 : i32
      %142 = vector.broadcast %c2_i32 : i32 to vector<1x128xi32>
      %143 = arith.cmpi eq, %3, %142 : vector<1x128xi32>
      %cst_61 = arith.constant 0.000000e+00 : f32
      %144 = vector.shape_cast %139 : vector<1x1xf32> to vector<1x1xf32>
      %145 = vector.broadcast %144 : vector<1x1xf32> to vector<1x128xf32>
      %146 = vector.broadcast %cst_61 : f32 to vector<1x128xf32>
      %147 = arith.select %143, %145, %146 : vector<1x128xi1>, vector<1x128xf32>
      %148 = arith.addf %141, %147 : vector<1x128xf32>
      %c0_62 = arith.constant 0 : index
      %c0_63 = arith.constant 0 : index
      %c0_64 = arith.constant 0 : index
      %c0_65 = arith.constant 0 : index
      %149 = vector.load %arg8[%c0_62, %c0_63, %c0_64, %c0_65] : memref<1x1x1x128xf32, #tpu.memory_space<vmem>>, vector<1x1x1x128xf32>
      %150 = vector.shape_cast %149 : vector<1x1x1x128xf32> to vector<1x128xf32>
      %151 = vector.shape_cast %148 : vector<1x128xf32> to vector<1x1x1x128xf32>
      tpu.vector_store %arg8[%c0_62, %c0_63, %c0_64, %c0_65], %151 {strides = array<i32>} : memref<1x1x1x128xf32, #tpu.memory_space<vmem>>, vector<1x1x1x128xf32>,
    } else {
    }
    %c0_4 = arith.constant 0 : index
    %c0_5 = arith.constant 0 : index
    %c0_6 = arith.constant 0 : index
    %12 = vector.load %arg3[%c0_4, %c0_5, %c0_6] : memref<1x16x128xbf16, #tpu.memory_space<vmem>>, vector<1x16x128xbf16>
    %13 = vector.shape_cast %12 : vector<1x16x128xbf16> to vector<16x128xbf16>
    %c0_7 = arith.constant 0 : index
    %c0_8 = arith.constant 0 : index
    %c0_9 = arith.constant 0 : index
    %14 = vector.load %arg4[%c0_7, %c0_8, %c0_9] : memref<1x16x128xbf16, #tpu.memory_space<vmem>>, vector<1x16x128xbf16>
    %15 = vector.shape_cast %14 : vector<1x16x128xbf16> to vector<16x128xbf16>
    %16 = arith.negf %13 : vector<16x128xbf16>
    %17 = math.exp %16 : vector<16x128xbf16>
    %cst = arith.constant 1.000000e+00 : bf16
    %18 = vector.broadcast %cst : bf16 to vector<16x128xbf16>
    %19 = arith.addf %18, %17 : vector<16x128xbf16>
    %20 = arith.divf %18, %19 : vector<16x128xbf16>
    %cst_10 = arith.constant 1.000000e+00 : bf16
    %21 = vector.broadcast %cst_10 : bf16 to vector<16x128xbf16>
    %22 = arith.subf %21, %20 : vector<16x128xbf16>
    %23 = arith.maximumf %20, %22 : vector<16x128xbf16>
    %24 = math.log %23 : vector<16x128xbf16>
    %25 = arith.extf %13 : vector<16x128xbf16> to vector<16x128xf32>
    %26 = arith.extf %15 : vector<16x128xbf16> to vector<16x128xf32>
    %27 = arith.extf %20 : vector<16x128xbf16> to vector<16x128xf32>
    %cst_11 = arith.constant 0.000000e+00 : f32
    %28 = vector.broadcast %cst_11 : f32 to vector<16x128xf32>
    %29 = arith.maximumf %25, %28 : vector<16x128xf32>
    %30 = arith.mulf %25, %26 : vector<16x128xf32>
    %31 = arith.subf %29, %30 : vector<16x128xf32>
    %32 = arith.extf %24 : vector<16x128xbf16> to vector<16x128xf32>
    %33 = arith.subf %31, %32 : vector<16x128xf32>
    %cst_12 = arith.constant dense<0.000000e+00> : vector<16xf32>
    %34 = vector.multi_reduction <add>, %33, %cst_12 [1] : vector<16x128xf32> to vector<16xf32>
    %35 = vector.shape_cast %34 : vector<16xf32> to vector<16x1xf32>
    %36 = vector.broadcast %0 : f32 to vector<16x1xf32>
    %37 = arith.mulf %35, %36 : vector<16x1xf32>
    %38 = arith.mulf %27, %26 : vector<16x128xf32>
    %cst_13 = arith.constant dense<0.000000e+00> : vector<16xf32>
    %39 = vector.multi_reduction <add>, %38, %cst_13 [1] : vector<16x128xf32> to vector<16xf32>
    %40 = vector.shape_cast %39 : vector<16xf32> to vector<16x1xf32>
    %cst_14 = arith.constant 2.000000e+00 : f32
    %41 = vector.broadcast %cst_14 : f32 to vector<16x1xf32>
    %42 = arith.mulf %41, %40 : vector<16x1xf32>
    %cst_15 = arith.constant dense<0.000000e+00> : vector<16xf32>
    %43 = vector.multi_reduction <add>, %27, %cst_15 [1] : vector<16x128xf32> to vector<16xf32>
    %44 = vector.shape_cast %43 : vector<16xf32> to vector<16x1xf32>
    %cst_16 = arith.constant dense<0.000000e+00> : vector<16xf32>
    %45 = vector.multi_reduction <add>, %26, %cst_16 [1] : vector<16x128xf32> to vector<16xf32>
    %46 = vector.shape_cast %45 : vector<16xf32> to vector<16x1xf32>
    %47 = arith.addf %44, %46 : vector<16x1xf32>
    %cst_17 = arith.constant 1.000000e+00 : f32
    %48 = vector.broadcast %cst_17 : f32 to vector<16x1xf32>
    %49 = arith.addf %42, %48 : vector<16x1xf32>
    %cst_18 = arith.constant 1.000000e+00 : f32
    %50 = vector.broadcast %cst_18 : f32 to vector<16x1xf32>
    %51 = arith.addf %47, %50 : vector<16x1xf32>
    %52 = arith.divf %49, %51 : vector<16x1xf32>
    %cst_19 = arith.constant 1.000000e+00 : f32
    %53 = vector.broadcast %cst_19 : f32 to vector<16x1xf32>
    %54 = arith.subf %53, %52 : vector<16x1xf32>
    %c1_i32 = arith.constant 1 : i32
    %55 = arith.muli %arg1, %c1_i32 : i32
    %56 = arith.addi %55, %arg2 : i32
    %c16_i32 = arith.constant 16 : i32
    %57 = arith.muli %56, %c16_i32 : i32
    %58 = tpu.iota {dimensions = array<i32: 0>} : vector<16x1xi32>
    %59 = vector.broadcast %57 : i32 to vector<16x1xi32>
    %60 = arith.addi %58, %59 : vector<16x1xi32>
    %61 = arith.sitofp %60 : vector<16x1xi32> to vector<16x1xf32>
    %62 = vector.broadcast %2 : f32 to vector<16x1xf32>
    %63 = arith.cmpf olt, %61, %62 : vector<16x1xf32>
    %cst_20 = arith.constant 0.000000e+00 : f32
    %64 = vector.broadcast %cst_20 : f32 to vector<16x1xf32>
    %65 = arith.select %63, %37, %64 : vector<16x1xi1>, vector<16x1xf32>
    %cst_21 = arith.constant dense<0.000000e+00> : vector<1xf32>
    %66 = vector.multi_reduction <add>, %65, %cst_21 [0] : vector<16x1xf32> to vector<1xf32>
    %67 = vector.shape_cast %66 : vector<1xf32> to vector<1x1xf32>
    %cst_22 = arith.constant 0.000000e+00 : f32
    %68 = vector.broadcast %cst_22 : f32 to vector<16x1xf32>
    %69 = arith.select %63, %54, %68 : vector<16x1xi1>, vector<16x1xf32>
    %cst_23 = arith.constant dense<0.000000e+00> : vector<1xf32>
    %70 = vector.multi_reduction <add>, %69, %cst_23 [0] : vector<16x1xf32> to vector<1xf32>
    %71 = vector.shape_cast %70 : vector<1xf32> to vector<1x1xf32>
    %c0_24 = arith.constant 0 : index
    %c0_25 = arith.constant 0 : index
    %c0_26 = arith.constant 0 : index
    %c0_27 = arith.constant 0 : index
    %72 = vector.load %arg8[%c0_24, %c0_25, %c0_26, %c0_27] : memref<1x1x1x128xf32, #tpu.memory_space<vmem>>, vector<1x1x1x128xf32>
    %73 = vector.shape_cast %72 : vector<1x1x1x128xf32> to vector<1x128xf32>
    %c0_i32_28 = arith.constant 0 : i32
    %74 = vector.broadcast %c0_i32_28 : i32 to vector<1x128xi32>
    %75 = arith.cmpi eq, %3, %74 : vector<1x128xi32>
    %cst_29 = arith.constant 0.000000e+00 : f32
    %76 = vector.shape_cast %67 : vector<1x1xf32> to vector<1x1xf32>
    %77 = vector.broadcast %76 : vector<1x1xf32> to vector<1x128xf32>
    %78 = vector.broadcast %cst_29 : f32 to vector<1x128xf32>
    %79 = arith.select %75, %77, %78 : vector<1x128xi1>, vector<1x128xf32>
    %c1_i32_30 = arith.constant 1 : i32
    %80 = vector.broadcast %c1_i32_30 : i32 to vector<1x128xi32>
    %81 = arith.cmpi eq, %3, %80 : vector<1x128xi32>
    %cst_31 = arith.constant 0.000000e+00 : f32
    %82 = vector.shape_cast %71 : vector<1x1xf32> to vector<1x1xf32>
    %83 = vector.broadcast %82 : vector<1x1xf32> to vector<1x128xf32>
    %84 = vector.broadcast %cst_31 : f32 to vector<1x128xf32>
    %85 = arith.select %81, %83, %84 : vector<1x128xi1>, vector<1x128xf32>
    %86 = arith.addf %79, %85 : vector<1x128xf32>
    %87 = vector.broadcast %1 : f32 to vector<1x128xf32>
    %88 = arith.mulf %86, %87 : vector<1x128xf32>
    %89 = arith.addf %73, %88 : vector<1x128xf32>
    %c0_32 = arith.constant 0 : index
    %c0_33 = arith.constant 0 : index
    %c0_34 = arith.constant 0 : index
    %c0_35 = arith.constant 0 : index
    %90 = vector.load %arg8[%c0_32, %c0_33, %c0_34, %c0_35] : memref<1x1x1x128xf32, #tpu.memory_space<vmem>>, vector<1x1x1x128xf32>
    %91 = vector.shape_cast %90 : vector<1x1x1x128xf32> to vector<1x128xf32>
    %92 = vector.shape_cast %89 : vector<1x128xf32> to vector<1x1x1x128xf32>
    tpu.vector_store %arg8[%c0_32, %c0_33, %c0_34, %c0_35], %92 {strides = array<i32>} : memref<1x1x1x128xf32, #tpu.memory_space<vmem>>, vector<1x1x1x128xf32>,
    return
  }
  func.func @transform_0(%arg0: i32, %arg1: i32, %arg2: i32) -> (i32, i32, i32) {
    %c1_i32 = arith.constant 1 : i32
    %0 = arith.muli %arg1, %c1_i32 : i32
    %1 = arith.addi %0, %arg2 : i32
    %c0_i32 = arith.constant 0 : i32
    %c0_i32_0 = arith.constant 0 : i32
    return %arg0, %1, %c0_i32 : i32, i32, i32
  }
  func.func @transform_1(%arg0: i32, %arg1: i32, %arg2: i32) -> (i32, i32, i32) {
    %c1_i32 = arith.constant 1 : i32
    %0 = arith.muli %arg1, %c1_i32 : i32
    %1 = arith.addi %0, %arg2 : i32
    %c0_i32 = arith.constant 0 : i32
    %c0_i32_0 = arith.constant 0 : i32
    return %arg0, %1, %c0_i32 : i32, i32, i32
  }
  func.func @transform_2(%arg0: i32, %arg1: i32, %arg2: i32) -> (i32, i32, i32) {
    %c0_i32 = arith.constant 0 : i32
    %c0_i32_0 = arith.constant 0 : i32
    %c0_i32_1 = arith.constant 0 : i32
    return %arg0, %c0_i32, %c0_i32_0 : i32, i32, i32
  }
  func.func @transform_3(%arg0: i32, %arg1: i32, %arg2: i32) -> (i32, i32, i32) {
    %c0_i32 = arith.constant 0 : i32
    %c0_i32_0 = arith.constant 0 : i32
    %c0_i32_1 = arith.constant 0 : i32
    return %arg0, %c0_i32, %c0_i32_0 : i32, i32, i32
  }
  func.func @transform_4(%arg0: i32, %arg1: i32, %arg2: i32) -> i32 {
    %c0_i32 = arith.constant 0 : i32
    %c0_i32_0 = arith.constant 0 : i32
    return %c0_i32 : i32
  }
  func.func @transform_5(%arg0: i32, %arg1: i32, %arg2: i32) -> (i32, i32, i32, i32) {
    %c0_i32 = arith.constant 0 : i32
    %c0_i32_0 = arith.constant 0 : i32
    %c0_i32_1 = arith.constant 0 : i32
    return %arg0, %arg1, %c0_i32, %c0_i32_0 : i32, i32, i32, i32
  }
}

</mosaic_0001>

<bundles_post_ra>
// kernel: tpu_custom_call.1
= control target key start
LH: loop header
LB: loop body
LE: loop exit
PB: predicated region body
PF: predicated region fallthrough
CT: control target
= control target key end

     0   :  { %s1411_s0 = inlined_call_operand.hbm [shape: bf16[2,16,128], index: 0, kind: input, shape index: {}]   ;;  %s1412_s1 = inlined_call_operand.hbm [shape: bf16[2,16,128], index: 1, kind: input, shape index: {}]   ;;  %s1413_s2 = inlined_call_operand.hbm [shape: f32[2,4,16], index: 2, kind: input, shape index: {}]   ;;  %s1414_s3 = inlined_call_operand.vmem [shape: s32[2,1,16], index: 3, kind: input, shape index: {}]   ;;  %s1415_s4 = inlined_call_operand.vmem [shape: f32[3], index: 4, kind: input, shape index: {}]   ;;  %s1416_s5 = inlined_call_operand.hbm [shape: f32[2,1,1,128], index: 5, kind: output, shape index: {}]  }
   0x1   :  { %1421 = sst [smem:[#allocation17_spill]] %s1412_s1 }
   0x2   :  { %1422 = sst [smem:[#allocation18_spill]] %s1415_s4 }
   0x3   :  { %10 = vsyncpa [#allocation3], 0 }
   0x4   :  { %12 = vsyncpa [#allocation3 + $0x1], 0 }
   0x5   :  { %13 = vsyncpa [#allocation7], 0 }
   0x6   :  { %15 = vsyncpa [#allocation7 + $0x1], 0 }
   0x7   :  { %16 = vsyncpa [#allocation5], 0 }
   0x8   :  { %17 = vsyncpa [#allocation4], 0 }
   0x9   :  { %19 = vsyncpa [#allocation4 + $0x1], 0  ;;  %s1120_s18 = smov 0   ;;  %s1122_s19 = smov 0  }
   0xa   :  { %s1124_s20 = smov 0   ;;  %s1126_s21 = smov 0  }
   0xb   :  { %s1128_s22 = smov 0   ;;  %s1130_s23 = smov 0  }
   0xc LB: > { %s44_s24 = sadd.s32 1, %s1075_s22  ;;  %s55_s25 = sadd.s32 1, %s1067_s20  ;;  %s1079_s23 = sphi %s1130_s23, %s25_s23   ;;  %s1075_s22 = sphi %s1128_s22, %s1444_s22   ;;  %s1071_s21 = sphi %s1126_s21, %s1443_s21   ;;  %s1067_s20 = sphi %s1124_s20, %s1442_s20   ;;  %s1063_s19 = sphi %s1122_s19, %s1441_s19   ;;  %s1059_s18 = sphi %s1120_s18, %s1440_s18  }
   0xd   : > { %p46_p0 = scmp.ge.s32.totalorder %s44_s24, 2  ;;  %p62_p1 = scmp.ne.s32.totalorder %s1067_s20, %s1063_s19 }
   0xe   : > { %p63_p2 = scmp.eq.s32.totalorder %s1079_s23, 0  ;;  %p814_p5 = scmp.lt.s32.totalorder %s1079_s23, 2 }
   0xf   : > { %s1446_s24 = smov (%p46_p0, %s44_s24), 0  ;;  %s1165_s27 = sand.u32 1, %s1067_s20  }
  0x10   : > { %1423 = sst [smem:[#allocation15_spill]] %s1446_s24  ;;  %p64_p4 = por %p63_p2, %p62_p1 }
  0x11   : > { %s50_s26 = ssub.s32 %s1075_s22, %s1446_s24  ;;  %s757_s28 = sshll.u32 %s1165_s27, 3 }
  0x12   : > { %p53_p6 = scmp.eq.s32.totalorder %s50_s26, 0  ;;  %s777_s29 = sshll.u32 %s1075_s22, 7 }
  0x13   : > { %p1169_p7 = pnand %p814_p5, %p64_p4  ;;  %s258_s7 = sand.u32 1, %s1079_s23  }
  0x14   : > { %s1174_s6 = scalar_select %p53_p6, %s1067_s20, %s55_s25  }
  0x15   : > { %s1426_s1 = sld [smem:[#allocation17_spill]]  ;;  %s262_s11 = scalar_lea.vmem [#allocation6], %s757_s28 }
  0x16   : > { %1425 = sst [smem:[#allocation16_spill]] %s1174_s6  ;;  %s272_s12 = sshll.u32 %s262_s11, 4  ;;  %s273_s12 = int_to_ptr.vmem [resolvable:$true] %s272_s12 }
  0x17   : > { %s1184_s13 = scalar_lea.sflag [#allocation7], %s258_s7  ;;  %p894_p8 = pneg %p1169_p7 }
  0x18   : > { %s905_s14 = scalar_lea.vmem %s273_s12, 128  ;;  %s1081_s15 = smov [#allocation6]  }
  0x19   : > { %p906_p9 = scmp.ne.s32.totalorder %s273_s12, %s905_s14  ;;  %s910_s16 = sshll.u32 %s1081_s15, 4  ;;  %s911_s16 = int_to_ptr.vmem [resolvable:$false] %s910_s16 }
  0x1a   : > { %s912_s17 = scalar_lea.vmem %s911_s16, 256  ;;  %p913_p12 = scmp.lt.s32.totalorder %s273_s12, %s911_s16 }
  0x1b   : > { %s271_s10 = scalar_lea.hbm %s1426_s1, %s777_s29  ;;  %p908_p10 = pnand %p906_p9, %p894_p8 }
  0x1c   : > { %p914_p13 = scmp.lt.s32.totalorder %s912_s17, %s905_s14 }
  0x1d   : > { %p909_p11 = pneg %p908_p10 }
  0x1e   : > { %p915_p0 = por %p914_p13, %p913_p12 }
  0x20   : > { %p916_p2 = pnand %p915_p0, %p909_p11 }
  0x22   : > { %919 = shalt.err (!%p916_p2)
}
  0x23   : > { %s1417_s25 = smov 64   ;;  %s1418_s26 = smov 4  }
  0x24   : > { %805 = dma.hbm_to_vmem [thread:$0]  (!%p1169_p7), %s271_s10, 128, %s273_s12, %s1184_s13, %s1417_s25, %s1417_s25, %s1418_s26  }
  0x25   : > { %s1198_s7 = sadd.s32 4294967295, %s1079_s23   ;;  %s753_s8 = sadd.s32 4294967294, %s1079_s23  }
  0x26   : > { %p68_p4 = scmp.ne.s32.totalorder %s1063_s19, %s1059_s18  ;;  %p69_p5 = scmp.eq.s32.totalorder %s1198_s7, 0 }
  0x27   : > { %p197_p6 = scmp.eq.s32.totalorder %s1198_s7, 1  ;;  %p203_p9 = scmp.eq.s32.totalorder %s753_s8, 1 }
  0x28   : > { %p754_p10 = scmp.ge.s32.totalorder %s1079_s23, 1  ;;  %p1208_p11 = por %p69_p5, %p68_p4 }
  0x29   : > { %p1215_p12 = por %p197_p6, %p62_p1  ;;  %p1219_p13 = por %p203_p9, %p68_p4 }
  0x2a   : > { %p210_p0 = scmp.lt.s32.totalorder %s1079_s23, 3  ;;  %s1430_s4 = sld [smem:[#allocation18_spill]] }
  0x2b   : > { %s1428_s10 = scalar_select %p1215_p12, 1, 0 }
  0x2c   : > { %s1429_s11 = scalar_select %p1219_p13, 1, 0 }
  0x2d   : > { %p1227_p2 = pnand %p754_p10, %p210_p0  ;;  %s247_s25 = scalar_lea.hbm %s1411_s0, %s777_s29 }
  0x2e   : > { %s238_s26 = scalar_lea.vmem [#allocation2], %s757_s28  ;;  %s235_s14 = scalar_lea.sflag [#allocation3], %s1165_s27 }
  0x2f   : > { %p795_p1 = pneg %p1227_p2  ;;  %s248_s1 = sshll.u32 %s238_s26, 4  ;;  %s249_s1 = int_to_ptr.vmem [resolvable:$true] %s248_s1 }
  0x30   : > { %s223_s15 = sshll.u32 %s1430_s4, 4  ;;  %s933_s4 = scalar_lea.vmem %s249_s1, 128  ;;  %s1231_s15 = int_to_ptr.vmem [resolvable:$true] %s223_s15 }
  0x31   : > { %p1244_p4 = pnand %p795_p1, %p69_p5  ;;  %p934_p6 = scmp.ne.s32.totalorder %s249_s1, %s933_s4 }
  0x32   : > { %s1084_s24 = smov [#allocation2]  }
  0x33   : > { %p936_p9 = pnand %p934_p6, %p894_p8  ;;  %s938_s6 = sshll.u32 %s1084_s24, 4  ;;  %s939_s6 = int_to_ptr.vmem [resolvable:$false] %s938_s6 }
  0x34   : > { %s940_s29 = scalar_lea.vmem %s939_s6, 256  ;;  %p941_p0 = scmp.lt.s32.totalorder %s249_s1, %s939_s6 }
  0x35   : > { %p937_p10 = pneg %p936_p9  ;;  %p942_p3 = scmp.lt.s32.totalorder %s940_s29, %s933_s4 }
  0x37   : > { %p943_p13 = por %p942_p3, %p941_p0 }
  0x39   : > { %p944_p12 = pnand %p943_p13, %p937_p10 }
  0x3b   : > { %947 = shalt.err (!%p944_p12)
}
  0x3c   : > { %s1433_s28 = smov 4   ;;  %s1434_s26 = smov 64  }
  0x3d   : > { %802 = dma.hbm_to_vmem [thread:$0]  (!%p1169_p7), %s247_s25, 128, %s249_s1, %s235_s14, %s1434_s26, %s1434_s26, %s1433_s28  }
  0x3e   : > { %s763_s17 = sshll.u32 %s1165_s27, 2  ;;  %s948_s24 = scalar_lea.vmem %s1231_s15, 16 }
  0x3f   : > { %p949_p1 = scmp.ne.s32.totalorder %s1231_s15, %s948_s24  ;;  %p950_p6 = pneg %p1244_p4 }
  0x40   : > { %p956_p12 = scmp.lt.s32.totalorder %s1231_s15, %s1231_s15  ;;  %p957_p13 = scmp.lt.s32.totalorder %s948_s24, %s948_s24 }
  0x41   : > { %p951_p9 = pnand %p950_p6, %p949_p1 }
  0x42   : > { %p958_p10 = por %p957_p13, %p956_p12 }
  0x43   : > { %p952_p3 = pneg %p951_p9 }
  0x45   : > { %p959_p0 = pnand %p958_p10, %p952_p3 }
  0x47   : > { %962 = shalt.err (!%p959_p0)
}
  0x48   : > { %s1085_s4 = smov [#allocation9]   ;;  %s764_s1 = sshll.u32 %s1075_s22, 6 }
  0x49   : > { %798 = dma.vmem_to_smem (!%p1244_p4), %s1231_s15, 16, %s1085_s4, [#allocation5]  }
  0x4a   : > { %s291_s25 = scalar_lea.hbm %s1413_s2, %s764_s1  ;;  %s286_s8 = scalar_lea.vmem [#allocation8], %s763_s17 }
  0x4b   : > { %s293_s14 = sshll.u32 %s286_s8, 4  ;;  %s1086_s28 = smov [#allocation8]   ;;  %s294_s14 = int_to_ptr.vmem [resolvable:$true] %s293_s14 }
  0x4c   : > { %s976_s29 = scalar_lea.vmem %s294_s14, 64  ;;  %s981_s12 = sshll.u32 %s1086_s28, 4  ;;  %s982_s12 = int_to_ptr.vmem [resolvable:$false] %s981_s12 }
  0x4d   : > { %p977_p1 = scmp.ne.s32.totalorder %s294_s14, %s976_s29  ;;  %s983_s26 = scalar_lea.vmem %s982_s12, 128 }
  0x4e   : > { %p984_p3 = scmp.lt.s32.totalorder %s294_s14, %s982_s12  ;;  %p985_p4 = scmp.lt.s32.totalorder %s983_s26, %s976_s29 }
  0x4f   : > { %p979_p6 = pnand %p977_p1, %p894_p8 }
  0x50   : > { %p986_p12 = por %p985_p4, %p984_p3 }
  0x51   : > { %p980_p9 = pneg %p979_p6 }
  0x53   : > { %p987_p13 = pnand %p986_p12, %p980_p9 }
  0x55   : > { %990 = shalt.err (!%p987_p13)
}
  0x56   : > { %808 = dma.hbm_to_vmem [thread:$0]  (!%p1169_p7), %s291_s25, 64, %s294_s14, %s1184_s13  }
  0x57   : > { %308 = sbr.rel (%p1227_p2) target bundleno = 357 (0x165), region = 40  ;;  %s1280_s15 = sand.u32 (!%p1227_p2), 1, %s1063_s19  }
  0x58   : > { %s766_s17 = sshll.u32 (!%p1227_p2), %s1280_s15, 3  ;;  %s311_s24 = scalar_lea.sflag (!%p1227_p2), [#allocation3], %s1280_s15 }
  0x59   : > { %s314_s4 = scalar_lea.vmem (!%p1227_p2), [#allocation2], %s766_s17 }
  0x5c   : > { %1042 = dma.done.wait (%p1208_p11), %s311_s24, 128  }
  0x5d   : > { %1044 = vsyncadd (%p1208_p11), %s311_s24, 4294967168  ;;  %s319_s30 = sand.u32 1, %s1198_s7   ;;  %s323_s16 = scalar_lea.vmem [#allocation6], %s766_s17 }
  0x5e   : > { %s320_s13 = scalar_lea.sflag [#allocation7], %s319_s30 }
  0x5f   : > { %1046 = dma.done.wait (%p1208_p11), %s320_s13, 192  }
  0x60   : > { %1048 = vsyncadd (%p1208_p11), %s320_s13, 4294967104  ;;  %s768_s1 = sshll.u32 %s1280_s15, 2 }
  0x61   : > { %s332_s27 = scalar_lea.vmem [#allocation8], %s768_s1 }
  0x62   : > { %1050 = dma.done.wait (%p69_p5), [#allocation5], 16  }
  0x63   : > { %1052 = vsyncadd (%p69_p5), [#allocation5], 4294967280 }
  0x64   : > { %341 = sfence }
  0x65   : > { %v780_v0 = vld [vmem:[%s323_s16] sm:$0xff]   ;;  %v1298_v1 = vld [vmem:[%s314_s4] sm:$0xf]  ;;  %v1300_v2 = vld [vmem:[%s314_s4 + $0x4] sm:$0xf]  ;;  %p380_p7 = scmp.lt.s32.totalorder %s1071_s21, 1  ;;  %v387_v3 = vlaneseq }
  0x66   : > { %v1303_v4 = vunpack.c.l.bf16 %v780_v0  ;;  %v772_v5 = vmul.bf16 3216621497, %v1298_v1  ;;  %v773_v6 = vmul.bf16 3216621497, %v1300_v2  ;;  %v1307_v7 = vld [vmem:[%s332_s27] sm:$0xf]  ;;  %v1314_v9 = vunpack.c.h.bf16 %v780_v0 }
  0x67   : > { %s381_s7 = scalar_select %p380_p7, %s1071_s21, 1  ;;  %v1311_v8 = vshrl.u32 %v387_v3, 7  ;;  %vm405_vm0 = vcmask 125952   ;;  %v1087_v16 = vmov 1.0   ;;  %vm452_vm4 = vcmask 122880  }
  0x68   : > { %531 = vadd.xlane.f32.xlu1 %v1303_v4  ;;  %870 = vpow.bf16 %v772_v5  ;;  %v406_v10 = vsel %vm405_vm0, %v1307_v7, -inf  ;;  %v496_v58 = vunpack.c.l.bf16 %v1298_v1  ;;  %v497_v59 = vunpack.c.l.bf16 %v1300_v2  ;;  %s1360_s8 = scalar_lea.vmem [#allocation10], %s1280_s15  ;;  %s771_s14 = sld [smem:[#allocation9 + $0x2]] }
  0x69   : > { %872 = vpow.bf16 %v773_v6  ;;  %s382_s25 = scalar_lea.vmem %s1414_s3, %s381_s7  ;;  %v407_v11 = vrot.slane %v406_v10, 4  ;;  %v429_v12 = vsub.s32 0, %v1311_v8  ;;  %vm403_vm1 = vcmp.eq.s32.totalorder %v1311_v8, 0  ;;  %s384_s29 = sld [smem:[#allocation9]] }
  0x6a   : > { %v1322_v13 = vld [vmem:[%s382_s25] sm:$0x1]  ;;  %v404_v17 = vsel %vm403_vm1, 0.1, %v1087_v16  ;;  %v502_v60 = vmax.f32 %v496_v58, 0.0  ;;  %v504_v61 = vmul.f32 %v1303_v4, %v496_v58  ;;  %v503_v62 = vmax.f32 %v497_v59, 0.0 }
  0x6b   : > { %v408_v14 = vmax.f32 %v406_v10, %v407_v11  ;;  %v1326_v15 = vrot.slane %v1322_v13, %v429_v12  ;;  %vm448_vm3 = vcmp.ne.s32.totalorder %v1322_v13, 4294967196  ;;  %v505_v63 = vmul.f32 %v1314_v9, %v497_v59  ;;  %s770_s28 = sld [smem:[#allocation9 + $0x1]]  ;;  %s774_s12 = sshll.u32 %s1071_s21, 4 }
  0x6c   : > { %533 = vadd.xlane.f32.xlu1 %v1314_v9  ;;  %v506_v10 = vsub.f32 %v502_v60, %v504_v61  ;;  %s602_s26 = sshll.u32 %s1360_s8, 4  ;;  %s600_s4 = scalar_lea.hbm %s1416_s5, %s774_s12  ;;  %s603_s26 = int_to_ptr.vmem [resolvable:$true] %s602_s26 }
  0x6d   : > { %v409_v18 = vrot.slane %v408_v14, 2  ;;  %vm431_vm2 = vcmp.eq.s32.totalorder %v1311_v8, %v1326_v15  ;;  %v507_v12 = vsub.f32 %v503_v62, %v505_v63  ;;  %s589_s30 = scalar_lea.sflag [#allocation4], %s1280_s15  ;;  %s991_s13 = scalar_lea.vmem %s603_s26, 16 }
  0x6e   : > { %v440_v20 = vsel %vm431_vm2, %v404_v17, 0.0  ;;  %p992_p8 = scmp.ne.s32.totalorder %s603_s26, %s991_s13  ;;  %p1435_p5 = scmp.ne.s32.totalorder %s1428_s10, 0 }
  0x6f   : > { %v410_v19 = vmax.f32 %v408_v14, %v409_v18  ;;  %v441_v23 = vsel %vm405_vm0, %v440_v20, 0.0  ;;  %s1089_s16 = smov [#allocation10]  }
  0x70   : > { %v442_v26 = vrot.slane %v441_v23, 4  ;;  %p993_p11 = pnand %p992_p8, %p1435_p5  ;;  %s995_s1 = sshll.u32 %s1089_s16, 4  ;;  %s996_s1 = int_to_ptr.vmem [resolvable:$false] %s995_s1 }
  0x71   : > { %v411_v21 = vrot.slane %v410_v19, 1  ;;  %s997_s21 = scalar_lea.vmem %s996_s1, 32  ;;  %p998_p10 = scmp.lt.s32.totalorder %s603_s26, %s996_s1 }
  0x72   : > { %v443_v31 = vadd.f32 %v442_v26, %v441_v23  ;;  %p994_p2 = pneg %p993_p11  ;;  %p999_p0 = scmp.lt.s32.totalorder %s997_s21, %s991_s13 }
  0x73   : > { %v1334_v22 = vmax.f32 %v410_v19, %v411_v21 }
  0x74   : > { %v444_v32 = vrot.slane %v443_v31, 2  ;;  %p1000_p1 = por %p999_p0, %p998_p10 }
  0x75   : > { %v413_v24 = vsub.f32 %v1307_v7, %v1334_v22 }
  0x76   : > { %v871_v25 = vpop.eup %870  ;;  %v445_v33 = vadd.f32 %v444_v32, %v443_v31  ;;  %p1001_p6 = pnand %p1000_p1, %p994_p2 }
  0x77   : > { %v873_v27 = vpop.eup %872  ;;  %v480_v28 = vadd.bf16 1065369472, %v871_v25  ;;  %v414_v29 = vmul.f32 1.442695, %v413_v24 }
  0x78   : > { %v481_v30 = vadd.bf16 1065369472, %v873_v27  ;;  %v446_v34 = vrot.slane %v445_v33, 1 }
  0x79   : > { %874 = vrcp.bf16 %v480_v28 }
  0x7a   : > { %876 = vrcp.bf16 %v481_v30  ;;  %v447_v43 = vadd.f32 %v446_v34, %v445_v33 }
  0x7b   : > { %878 = vpow2.f32 %v414_v29 }
  0x7c   : > { %v456_v52 = vsel %vm448_vm3, %v447_v43, 0.0 }
  0x7d   : > { %v457_v54 = vsel %vm452_vm4, %v456_v52, 0.0 }
  0x87   : > { %v875_v35 = vpop.eup %874 }
  0x88   : > { %v877_v36 = vpop.eup %876  ;;  %v483_v38 = vmul.bf16 1065369472, %v875_v35 }
  0x89   : > { %v879_v37 = vpop.eup %878  ;;  %v485_v39 = vmul.bf16 1065369472, %v877_v36 }
  0x8a   : > { %v416_v40 = vsel %vm405_vm0, %v879_v37, 0.0  ;;  %v500_v41 = vunpack.c.l.bf16 %v483_v38  ;;  %v486_v44 = vsub.bf16 1065369472, %v483_v38 }
  0x8b   : > { %v417_v42 = vrot.slane %v416_v40, 4  ;;  %v487_v45 = vsub.bf16 1065369472, %v485_v39  ;;  %v501_v46 = vunpack.c.l.bf16 %v485_v39 }
  0x8c   : > { %527 = vadd.xlane.f32.xlu0 %v500_v41  ;;  %v519_v48 = vmul.f32 %v1303_v4, %v500_v41  ;;  %v488_v49 = vmax.bf16 %v486_v44, %v483_v38 }
  0x8d   : > { %v418_v47 = vadd.f32 %v417_v42, %v416_v40  ;;  %v489_v50 = vmax.bf16 %v487_v45, %v485_v39  ;;  %v520_v57 = vmul.f32 %v1314_v9, %v501_v46  ;;  %v555_v45 = vcvt.s32.f32 %v1311_v8 }
  0x8e   : > { %521 = vadd.xlane.f32.xlu1 %v519_v48  ;;  %880 = vlog2.bf16 %v488_v49  ;;  %v557_v48 = vstv %s771_s14 }
  0x8f   : > { %v419_v51 = vrot.slane %v418_v47, 2  ;;  %882 = vlog2.bf16 %v489_v50  ;;  %vm558_vm5 = vcmp.lt.f32.partialorder %v555_v45, %v557_v48 }
  0x90   : > { %529 = vadd.xlane.f32.xlu0 %v501_v46 }
  0x91   : > { %v420_v53 = vadd.f32 %v419_v51, %v418_v47  ;;  %v516_v51 = vstv %s384_s29 }
  0x93   : > { %v421_v55 = vrot.slane %v420_v53, 1 }
  0x94   : > { %458 = vadd.xlane.f32.xlu0 %v457_v54 }
  0x95   : > { %v422_v56 = vadd.f32 %v421_v55, %v420_v53 }
  0x97   : > { %884 = vlog2.f32 %v422_v56 }
  0x98   : > { %523 = vadd.xlane.f32.xlu0 %v520_v57 }
  0x9c   : > { %v881_v0 = vpop.eup %880 }
  0x9d   : > { %v883_v5 = vpop.eup %882  ;;  %v492_v6 = vmul.bf16 1060192049, %v881_v0 }
  0x9e   : > { %v495_v11 = vmul.bf16 1060192049, %v883_v5 }
  0x9f   : > { %v508_v14 = vunpack.c.l.bf16 %v492_v6 }
  0xa0   : > { %v509_v16 = vunpack.c.l.bf16 %v495_v11 }
  0xa1   : > { %v510_v17 = vsub.f32 %v506_v10, %v508_v14 }
  0xa2   : > { %v511_v1 = vsub.f32 %v507_v12, %v509_v16 }
  0xa3   : > { %512 = vadd.xlane.f32.xlu1 %v510_v17 }
  0xa4   : > { %v885_v18 = vpop.eup %884  ;;  %514 = vadd.xlane.f32.xlu0 %v511_v1 }
  0xa5   : > { %v424_v2 = vmul.f32 0.6931472, %v885_v18 }
  0xa7   : > { %v425_v4 = vadd.f32 %v424_v2, %v1334_v22  ;;  %v388_v2 = vand.u32 127, %v387_v3 }
  0xa9   : > { %v426_v19 = vsub.f32 %v1307_v7, %v425_v4  ;;  %v1088_v7 = vmov 0.0   ;;  %vm464_vm7 = vcmp.eq.s32.totalorder %v388_v2, 2  ;;  %vm579_vm8 = vcmp.eq.s32.totalorder %v388_v2, 0 }
  0xaa   : > { %393 = vst [vmem:[%s1360_s8] sm:$0x1] %v1088_v7  ;;  %vm581_vm9 = vcmp.eq.s32.totalorder %v388_v2, 1 }
  0xab   : > { %v432_v9 = vsel %vm431_vm2, %v426_v19, 0.0 }
  0xac   : > { %v433_v20 = vsel %vm405_vm0, %v432_v9, 0.0 }
  0xad   : > { %v434_v21 = vrot.slane %v433_v20, 4 }
  0xaf   : > { %v435_v23 = vadd.f32 %v434_v21, %v433_v20 }
  0xb1   : > { %v436_v24 = vrot.slane %v435_v23, 2 }
  0xb3   : > { %v437_v25 = vadd.f32 %v436_v24, %v435_v23  ;;  %v463_v23 = vld [vmem:[%s1360_s8] sm:$0x1] }
  0xb5   : > { %v438_v26 = vrot.slane %v437_v25, 1 }
  0xb7   : > { %v439_v27 = vadd.f32 %v438_v26, %v437_v25 }
  0xb9   : > { %v449_v28 = vsub.f32 0.0, %v439_v27 }
  0xbb   : > { %v450_v29 = vmul.f32 %v449_v28, %v447_v43  ;;  %v551_v43 = vadd.s32 8, %v1311_v8  ;;  %v584_v28 = vstv %s770_s28 }
  0xbd   : > { %v451_v30 = vsel %vm448_vm3, %v450_v29, 0.0  ;;  %v556_v49 = vcvt.s32.f32 %v551_v43 }
  0xbe   : > { %v453_v22 = vsel %vm452_vm4, %v451_v30, 0.0 }
  0xbf   : > { %454 = vadd.xlane.f32.xlu1 %v453_v22  ;;  %vm559_vm6 = vcmp.lt.f32.partialorder %v556_v49, %v557_v48 }
  0xf1   : > { %v532_v15 = vpop.xlane.xlu1 %531 }
  0xf5   : > { %v534_v33 = vpop.xlane.xlu1 %533 }
 0x115   : > { %v528_v31 = vpop.xlane.xlu0 %527 }
 0x116   : > { %v535_v32 = vadd.f32 %v532_v15, %v528_v31 }
 0x117   : > { %v522_v13 = vpop.xlane.xlu1 %521 }
 0x118   : > { %v539_v34 = vadd.f32 1.0, %v535_v32  ;;  %v525_v39 = vmul.f32 2.0, %v522_v13 }
 0x119   : > { %v530_v35 = vpop.xlane.xlu0 %529 }
 0x11a   : > { %886 = vrcp.f32 %v539_v34  ;;  %v536_v36 = vadd.f32 %v534_v33, %v530_v35  ;;  %v537_v41 = vadd.f32 1.0, %v525_v39 }
 0x11c   : > { %v540_v37 = vadd.f32 1.0, %v536_v36 }
 0x11d   : > { %v459_v38 = vpop.xlane.xlu0 %458 }
 0x11e   : > { %888 = vrcp.f32 %v540_v37  ;;  %v460_v6 = vmax.f32 %v459_v38, 1e-12 }
 0x120   : > { %890 = vrcp.f32 %v460_v6 }
 0x121   : > { %v524_v40 = vpop.xlane.xlu0 %523 }
 0x122   : > { %v526_v42 = vmul.f32 2.0, %v524_v40 }
 0x124   : > { %v538_v47 = vadd.f32 1.0, %v526_v42 }
 0x127   : > { %v887_v44 = vpop.eup %886 }
 0x128   : > { %v542_v46 = vmul.f32 %v887_v44, %v537_v41 }
 0x12a   : > { %v545_v50 = vsub.f32 1.0, %v542_v46 }
 0x12b   : > { %v889_v52 = vpop.eup %888 }
 0x12c   : > { %v544_v53 = vmul.f32 %v889_v52, %v538_v47  ;;  %v513_v54 = vpop.xlane.xlu1 %512  ;;  %v569_v58 = vsel %vm558_vm5, %v545_v50, 0.0 }
 0x12d   : > { %v517_v55 = vmul.f32 %v516_v51, %v513_v54  ;;  %v515_v56 = vpop.xlane.xlu0 %514  ;;  %v891_v4 = vpop.eup %890 }
 0x12e   : > { %v546_v57 = vsub.f32 1.0, %v544_v53  ;;  %v518_v59 = vmul.f32 %v516_v51, %v515_v56 }
 0x12f   : > { %v560_v60 = vsel %vm558_vm5, %v517_v55, 0.0 }
 0x130   : > { %v570_v61 = vsel %vm559_vm6, %v546_v57, 0.0  ;;  %v561_v62 = vsel %vm559_vm6, %v518_v59, 0.0 }
 0x131   : > { %v571_v8 = vadd.f32 %v570_v61, %v569_v58  ;;  %v562_v63 = vadd.f32 %v561_v62, %v560_v60 }
 0x133   : > { %v572_v0 = vrot.slane %v571_v8, 4  ;;  %v563_v5 = vrot.slane %v562_v63, 4 }
 0x135   : > { %v573_v10 = vadd.f32 %v572_v0, %v571_v8  ;;  %v564_v11 = vadd.f32 %v563_v5, %v562_v63 }
 0x137   : > { %v574_v12 = vrot.slane %v573_v10, 2  ;;  %v565_v14 = vrot.slane %v564_v11, 2 }
 0x139   : > { %v575_v16 = vadd.f32 %v574_v12, %v573_v10  ;;  %v566_v17 = vadd.f32 %v565_v14, %v564_v11 }
 0x13b   : > { %v576_v1 = vrot.slane %v575_v16, 1  ;;  %v567_v18 = vrot.slane %v566_v17, 1 }
 0x13d   : > { %v577_v9 = vadd.f32 %v576_v1, %v575_v16  ;;  %v568_v20 = vadd.f32 %v567_v18, %v566_v17 }
 0x13f   : > { %v580_v26 = vsel %vm579_vm8, %v568_v20, 0.0  ;;  %v582_v3 = vsel %vm581_vm9, %v577_v9, 0.0 }
 0x140   : > { %v583_v27 = vadd.f32 %v582_v3, %v580_v26 }
 0x142   : > { %v585_v29 = vmul.f32 %v584_v28, %v583_v27 }
 0x148   : > { %v455_v19 = vpop.xlane.xlu1 %454 }
 0x149   : > { %v462_v21 = vmul.f32 %v891_v4, %v455_v19 }
 0x14b   : > { %v465_v24 = vsel %vm464_vm7, %v462_v21, 0.0 }
 0x14c   : > { %v466_v25 = vadd.f32 %v465_v24, %v463_v23 }
 0x14e   : > { %467 = vst [vmem:[%s1360_s8] sm:$0x1] %v466_v25 }
 0x155   : > { %v578_v30 = vld [vmem:[%s1360_s8] sm:$0x1] }
 0x156   : > { %v586_v22 = vadd.f32 %v585_v29, %v578_v30 }
 0x158   : > { %587 = vst [vmem:[%s1360_s8] sm:$0x1] %v586_v22 }
 0x159   : > { %1004 = shalt.err (!%p1001_p6)
}
 0x15a   : > { %s1005_s27 = scalar_lea.hbm %s600_s4, 16  ;;  %s1009_s9 = scalar_lea.hbm %s1416_s5, 32 }
 0x15b   : > { %p1006_p9 = scmp.ne.s32.totalorder %s600_s4, %s1005_s27  ;;  %p1010_p12 = scmp.lt.s32.totalorder %s600_s4, %s1416_s5 }
 0x15c   : > { %p1011_p13 = scmp.lt.s32.totalorder %s1009_s9, %s1005_s27 }
 0x15d   : > { %p1007_p3 = pnand %p1006_p9, %p1435_p5 }
 0x15e   : > { %p1012_p7 = por %p1011_p13, %p1010_p12 }
 0x15f   : > { %p1008_p4 = pneg %p1007_p3 }
 0x161   : > { %p1013_p8 = pnand %p1012_p7, %p1008_p4 }
 0x163   : > { %1016 = shalt.err (!%p1013_p8)
}
 0x164   : > { %793 = dma.vmem_to_hbm [thread:$0]  (%p1435_p5), %s603_s26, 16, %s600_s4, %s589_s30  }
 0x165 PF: > { %s614_s8 = sand.u32 1, %s1059_s18   ;;  %p1436_p11 = scmp.ne.s32.totalorder %s1429_s11, 0 }
 0x166   : > { %p1437_p2 = scmp.ge.s32.totalorder %s1079_s23, 2  ;;  %s615_s14 = scalar_lea.sflag [#allocation4], %s614_s8 }
 0x168   : > { %p810_p10 = pnand %p1437_p2, %p1436_p11 }
 0x16a   : > { %p811_p0 = pneg %p810_p10 }
 0x16c   : > { %1054 = dma.done.wait (%p811_p0), %s615_s14, 16  }
 0x16d   : > { %1056 = vsyncadd (%p811_p0), %s615_s14, 4294967280  ;;  %s25_s23 = sadd.s32 1, %s1079_s23   ;;  %s1438_s29 = sld [smem:[#allocation16_spill]] }
 0x16e   : > { %p22_p1 = scmp.ge.s32.totalorder %s25_s23, 4   ;;  %s1439_s10 = sld [smem:[#allocation15_spill]] }
 0x16f   : > { %s1440_s18 = smov %s1063_s19  ;;  %s1441_s19 = smov %s1067_s20 }
 0x170   : > { %s1443_s21 = smov %s1075_s22  ;;  %24 = sbr.rel (!%p22_p1) target bundleno = 12 (0xc), region = 125 }
 0x173   : > { %s1442_s20 = smov %s1438_s29 }
 0x174   : > { %s1444_s22 = smov %s1439_s10 }
 0x175   :  { %619 = vsyncpa [#allocation3], 1 }
 0x176   :  { %621 = vsyncpa [#allocation3 + $0x1], 1 }
 0x177   :  { %622 = vsyncpa [#allocation7], 1 }
 0x178   :  { %624 = vsyncpa [#allocation7 + $0x1], 1 }
 0x179   :  { %625 = vsyncpa [#allocation4], 1 }
 0x17a   :  { %627 = vsyncpa [#allocation4 + $0x1], 1 }
 0x17b   :  { %628 = vsyncpa [#allocation5], 1 }
 0x17c   :  { %630 = vsyncpa [#allocation5 + $0x1], 1 }

</bundles_post_ra>
